<compile_context>
chip_gen: v7x
topology: tpu7x:2x2x1
jax: 0.10.0
libtpu: 0.0.40
codegen_flags: <defaults>
</compile_context>

<pallas_src>
import jax
import jax.numpy as jnp
from jax.experimental import pallas as pl
from jax.experimental.pallas import tpu as pltpu


def _convt_hardsigmoid_kernel(x_ref, w_ref, b_ref, o_ref):
    # x_ref: (Cin=3, M)        input pixels, M = N*H*W (lane dim, multiple of 128)
    # w_ref: (P, Cin=3)        P = Cout*KH*KW = 72 (sublane dim, multiple of 8)
    # b_ref: (P, 1)            holds (bias + 3), pre-folded at trace time
    # o_ref: (P, M)            lane-dense output -> unmasked vst
    x = x_ref[...]
    w = w_ref[...]
    # K=3 contraction unrolled as three VPU broadcast multiply-adds (outer products);
    # avoids MXU vmatmul push/pop + MRF drain latency for a 3-deep contraction.
    y = b_ref[...]                       # (P,1) broadcasts over lanes
    y = y + w[:, 0:1] * x[0:1, :]
    y = y + w[:, 1:2] * x[1:2, :]
    y = y + w[:, 2:3] * x[2:3, :]
    # hardsigmoid: clamp(conv + bias + 3, 0, 6) / 6   (the +3 is already in y)
    o_ref[...] = (jnp.clip(y, 0.0, 6.0) * (1.0 / 6.0)).astype(o_ref.dtype)


def model_forward(x, weight, bias, *, stride=3, output_padding=1):
    """x: (N, Cin, H, W); weight: (Cin, Cout, KH, KW) [PyTorch ConvTranspose2d layout];
    bias: (Cout,). Returns (N, Cout, Hout, Wout), Hout = (H-1)*stride + KH + output_padding."""
    N, Cin, H, W = x.shape
    Cin_w, Cout, KH, KW = weight.shape
    assert Cin_w == Cin and stride == KH == KW, "kernel assumes stride == kernel_size"

    Hout = (H - 1) * stride + KH + output_padding
    Wout = (W - 1) * stride + KW + output_padding

    M = N * H * W                       # 256  -> lane dim of the kernel output
    P = Cout * KH * KW                  # 72   -> sublane dim

    # Lane-dense orientation (free reshape for N == 1; tiny transpose under jit otherwise).
    x_flat = x.transpose(1, 0, 2, 3).reshape(Cin, M)              # (Cin, M)
    w_flat = weight.transpose(1, 2, 3, 0).reshape(P, Cin)         # (P, Cin)
    b_flat = jnp.broadcast_to((bias + 3.0)[:, None, None], (Cout, KH, KW)).reshape(P, 1)

    y = pl.pallas_call(
        _convt_hardsigmoid_kernel,
        out_shape=jax.ShapeDtypeStruct((P, M), jnp.float32),
        grid_spec=pltpu.PrefetchScalarGridSpec(
            num_scalar_prefetch=0,
            grid=(1,),
            in_specs=[
                pl.BlockSpec((Cin, M), lambda i: (0, 0)),
                pl.BlockSpec((P, Cin), lambda i: (0, 0)),
                pl.BlockSpec((P, 1), lambda i: (0, 0)),
            ],
            out_specs=pl.BlockSpec((P, M), lambda i: (0, 0)),
        ),
        compiler_params=pltpu.CompilerParams(
            dimension_semantics=("arbitrary",)),
    )(x_flat, w_flat, b_flat)

    # Layout glue (fused by jit): scatter the (KH,KW) blocks into the spatial grid.
    y = y.reshape(Cout, KH, KW, N, H, W)
    y = y.transpose(3, 0, 4, 1, 5, 2).reshape(N, Cout, H * KH, W * KW)

    # output_padding fringe receives only the bias -> hardsigmoid(bias) per channel.
    edge = jnp.clip(bias + 3.0, 0.0, 6.0) / 6.0                   # (Cout,)
    out = jnp.broadcast_to(edge[None, :, None, None], (N, Cout, Hout, Wout))
    out = out.at[:, :, : H * KH, : W * KW].set(y)
    return out


model_forward_jit = jax.jit(model_forward)


def reference_forward(x, weight, bias, *, stride=3, output_padding=1):
    """Naive pure-JAX transposed-conv reference (definitional scatter-add), f32-exact."""
    N, Cin, H, W = x.shape
    _, Cout, KH, KW = weight.shape
    Hout = (H - 1) * stride + KH + output_padding
    Wout = (W - 1) * stride + KW + output_padding
    out = jnp.zeros((N, Cout, Hout, Wout), jnp.float32)
    for kh in range(KH):
        for kw in range(KW):
            contrib = jnp.einsum("nchw,cd->ndhw", x, weight[:, :, kh, kw],
                                 precision=jax.lax.Precision.HIGHEST)
            out = out.at[:, :, kh:kh + (H - 1) * stride + 1:stride,
                         kw:kw + (W - 1) * stride + 1:stride].add(contrib)
    out = out + bias[None, :, None, None]
    return jnp.clip(out + 3.0, 0.0, 6.0) / 6.0


if __name__ == "__main__":
    key = jax.random.PRNGKey(0)
    kx, kw_, kb = jax.random.split(key, 3)

    # Shapes consistent with the PyTorch module: x = (1, 3, 16, 16)
    N, Cin, H, W = 1, 3, 16, 16
    Cout, KH, KW = 8, 3, 3

    x = jax.random.normal(kx, (N, Cin, H, W), dtype=jnp.float32)
    weight = 0.1 * jax.random.normal(kw_, (Cin, Cout, KH, KW), dtype=jnp.float32)
    bias = 0.1 * jax.random.normal(kb, (Cout,), dtype=jnp.float32)

    out = jax.block_until_ready(model_forward_jit(x, weight, bias))
    assert out.shape == (N, Cout, 49, 49), out.shape

    ref = jax.block_until_ready(reference_forward(x, weight, bias))
    assert jnp.max(jnp.abs(out - ref)) < 1e-5

    print("KERNEL_OK")
</pallas_src>

<mosaic_0001>
module attributes {stable_mosaic.version = 11 : i64} {
  func.func @_convt_hardsigmoid_kernel(%arg0: i32, %arg1: memref<3x256xf32, #tpu.memory_space<vmem>>, %arg2: memref<72x3xf32, #tpu.memory_space<vmem>>, %arg3: memref<72x1xf32, #tpu.memory_space<vmem>>, %arg4: memref<72x256xf32, #tpu.memory_space<vmem>>) attributes {dimension_semantics = [#tpu.dimension_semantics<arbitrary>], iteration_bounds = array<i64: 1>, scalar_prefetch = 0 : i64, scratch_operands = 0 : i64, tpu.core_type = #tpu.core_type<tc>, window_params = [{pipeline_mode = #tpu.pipeline_mode<synchronous>, transform_indices = @transform_0, window_bounds = array<i64: 3, 256>}, {pipeline_mode = #tpu.pipeline_mode<synchronous>, transform_indices = @transform_1, window_bounds = array<i64: 72, 3>}, {pipeline_mode = #tpu.pipeline_mode<synchronous>, transform_indices = @transform_2, window_bounds = array<i64: 72, 1>}, {pipeline_mode = #tpu.pipeline_mode<synchronous>, transform_indices = @transform_3, window_bounds = array<i64: 72, 256>}]} {
    %c0 = arith.constant 0 : index
    %c0_0 = arith.constant 0 : index
    %0 = vector.load %arg1[%c0, %c0_0] : memref<3x256xf32, #tpu.memory_space<vmem>>, vector<3x256xf32>
    %c0_1 = arith.constant 0 : index
    %c0_2 = arith.constant 0 : index
    %1 = vector.load %arg2[%c0_1, %c0_2] : memref<72x3xf32, #tpu.memory_space<vmem>>, vector<72x3xf32>
    %c0_3 = arith.constant 0 : index
    %c0_4 = arith.constant 0 : index
    %2 = vector.load %arg3[%c0_3, %c0_4] : memref<72x1xf32, #tpu.memory_space<vmem>>, vector<72x1xf32>
    %3 = vector.extract_strided_slice %1 {offsets = [0, 0], sizes = [72, 1], strides = [1, 1]} : vector<72x3xf32> to vector<72x1xf32>
    %4 = vector.extract_strided_slice %0 {offsets = [0, 0], sizes = [1, 256], strides = [1, 1]} : vector<3x256xf32> to vector<1x256xf32>
    %5 = vector.broadcast %3 : vector<72x1xf32> to vector<72x256xf32>
    %6 = vector.broadcast %4 : vector<1x256xf32> to vector<72x256xf32>
    %7 = arith.mulf %5, %6 : vector<72x256xf32>
    %8 = vector.broadcast %2 : vector<72x1xf32> to vector<72x256xf32>
    %9 = arith.addf %8, %7 : vector<72x256xf32>
    %10 = vector.extract_strided_slice %1 {offsets = [0, 1], sizes = [72, 1], strides = [1, 1]} : vector<72x3xf32> to vector<72x1xf32>
    %11 = vector.extract_strided_slice %0 {offsets = [1, 0], sizes = [1, 256], strides = [1, 1]} : vector<3x256xf32> to vector<1x256xf32>
    %12 = vector.broadcast %10 : vector<72x1xf32> to vector<72x256xf32>
    %13 = vector.broadcast %11 : vector<1x256xf32> to vector<72x256xf32>
    %14 = arith.mulf %12, %13 : vector<72x256xf32>
    %15 = arith.addf %9, %14 : vector<72x256xf32>
    %16 = vector.extract_strided_slice %1 {offsets = [0, 2], sizes = [72, 1], strides = [1, 1]} : vector<72x3xf32> to vector<72x1xf32>
    %17 = vector.extract_strided_slice %0 {offsets = [2, 0], sizes = [1, 256], strides = [1, 1]} : vector<3x256xf32> to vector<1x256xf32>
    %18 = vector.broadcast %16 : vector<72x1xf32> to vector<72x256xf32>
    %19 = vector.broadcast %17 : vector<1x256xf32> to vector<72x256xf32>
    %20 = arith.mulf %18, %19 : vector<72x256xf32>
    %21 = arith.addf %15, %20 : vector<72x256xf32>
    %cst = arith.constant 0.000000e+00 : f32
    %cst_5 = arith.constant 6.000000e+00 : f32
    %22 = vector.broadcast %cst : f32 to vector<72x256xf32>
    %23 = arith.maximumf %22, %21 : vector<72x256xf32>
    %24 = vector.broadcast %cst_5 : f32 to vector<72x256xf32>
    %25 = arith.minimumf %24, %23 : vector<72x256xf32>
    %cst_6 = arith.constant 0.166666672 : f32
    %26 = vector.broadcast %cst_6 : f32 to vector<72x256xf32>
    %27 = arith.mulf %25, %26 : vector<72x256xf32>
    %c0_7 = arith.constant 0 : index
    %c0_8 = arith.constant 0 : index
    %28 = vector.load %arg4[%c0_7, %c0_8] : memref<72x256xf32, #tpu.memory_space<vmem>>, vector<72x256xf32>
    tpu.vector_store %arg4[%c0_7, %c0_8], %27 {strides = array<i32>} : memref<72x256xf32, #tpu.memory_space<vmem>>, vector<72x256xf32>,
    return
  }
  func.func @transform_0(%arg0: i32) -> (i32, i32) {
    %c0_i32 = arith.constant 0 : i32
    %c0_i32_0 = arith.constant 0 : i32
    %c0_i32_1 = arith.constant 0 : i32
    return %c0_i32, %c0_i32_0 : i32, i32
  }
  func.func @transform_1(%arg0: i32) -> (i32, i32) {
    %c0_i32 = arith.constant 0 : i32
    %c0_i32_0 = arith.constant 0 : i32
    %c0_i32_1 = arith.constant 0 : i32
    return %c0_i32, %c0_i32_0 : i32, i32
  }
  func.func @transform_2(%arg0: i32) -> (i32, i32) {
    %c0_i32 = arith.constant 0 : i32
    %c0_i32_0 = arith.constant 0 : i32
    %c0_i32_1 = arith.constant 0 : i32
    return %c0_i32, %c0_i32_0 : i32, i32
  }
  func.func @transform_3(%arg0: i32) -> (i32, i32) {
    %c0_i32 = arith.constant 0 : i32
    %c0_i32_0 = arith.constant 0 : i32
    %c0_i32_1 = arith.constant 0 : i32
    return %c0_i32, %c0_i32_0 : i32, i32
  }
}

</mosaic_0001>

<bundles_post_ra>
// kernel: model_forward.1
= control target key start
LH: loop header
LB: loop body
LE: loop exit
PB: predicated region body
PF: predicated region fallthrough
CT: control target
= control target key end

     0   :  { %v443_v0 = vmov 0   ;;  %v444_v19 = vmov 1   ;;  %v445_v20 = vmov 2   ;;  %v79_v33 = vlaneseq  ;;  %s647_s1 = inlined_call_operand.vmem [shape: f32[72,3], index: 1, kind: input, shape index: {}]   ;;  %s648_s2 = inlined_call_operand.vmem [shape: f32[72,1], index: 2, kind: input, shape index: {}]   ;;  %s649_s0 = inlined_call_operand.vmem [shape: f32[3,256], index: 0, kind: input, shape index: {}]   ;;  %s650_s3 = inlined_call_operand.vmem [shape: f32[72,256], index: 3, kind: output, shape index: {}]  }
   0x1   :  { %438 = vset.pattern.permute.xlu1 %v443_v0  ;;  %437 = vset.pattern.permute.xlu0 %v443_v0  ;;  %v17_v1 = vld [vmem:[%s647_s1 + $0x10] sm:$0xff]  ;;  %v15_v2 = vld [vmem:[%s647_s1] sm:$0xff]  ;;  %v18_v3 = vld [vmem:[%s647_s1 + $0x18] sm:$0xff] }
   0x2   :  { %45 = vperm.xlu1 %438, %v17_v1   ;;  %35 = vperm.xlu0 %437, %v15_v2   ;;  %v16_v4 = vld [vmem:[%s647_s1 + $0x8] sm:$0xff]  ;;  %v19_v6 = vld [vmem:[%s647_s1 + $0x20] sm:$0xff]  ;;  %v22_v7 = vld [vmem:[%s647_s1 + $0x38] sm:$0xff]  ;;  %v80_v36 = vshrl.u32 %v79_v33, 7 }
   0x3   :  { %v20_v5 = vld [vmem:[%s647_s1 + $0x28] sm:$0xff]  ;;  %v21_v8 = vld [vmem:[%s647_s1 + $0x30] sm:$0xff]  ;;  %v24_v9 = vld [vmem:[%s648_s2] sm:$0xff] }
   0x4   :  { %v23_v10 = vld [vmem:[%s647_s1 + $0x40] sm:$0xff]  ;;  %v26_v11 = vld [vmem:[%s648_s2 + $0x10] sm:$0xff]  ;;  %v25_v12 = vld [vmem:[%s648_s2 + $0x8] sm:$0xff]  ;;  %v81_v39 = vsub.s32 0, %v80_v36  ;;  %v85_v40 = vsub.s32 4, %v80_v36  ;;  %v216_v44 = vsub.s32 1, %v80_v36 }
   0x5   :  { %v28_v13 = vld [vmem:[%s648_s2 + $0x20] sm:$0xff]  ;;  %v27_v14 = vld [vmem:[%s648_s2 + $0x18] sm:$0xff]  ;;  %v30_v15 = vld [vmem:[%s648_s2 + $0x30] sm:$0xff]  ;;  %v220_v45 = vsub.s32 5, %v80_v36  ;;  %v306_v46 = vsub.s32 2, %v80_v36  ;;  %v310_v47 = vsub.s32 6, %v80_v36 }
   0x6   :  { %50 = vperm.xlu1 %438, %v18_v3   ;;  %40 = vperm.xlu0 %437, %v16_v4   ;;  %v29_v16 = vld [vmem:[%s648_s2 + $0x28] sm:$0xff]  ;;  %v32_v17 = vld [vmem:[%s648_s2 + $0x40] sm:$0xff]  ;;  %v31_v18 = vld [vmem:[%s648_s2 + $0x38] sm:$0xff] }
   0x7   :  { %v14_v41 = vld [vmem:[%s649_s0] sm:$0x77] }
   0x8   :  { %v82_v48 = vrot.slane %v14_v41, %v81_v39  ;;  %v86_v49 = vrot.slane %v14_v41, %v85_v40  ;;  %v217_v50 = vrot.slane %v14_v41, %v216_v44  ;;  %v221_v51 = vrot.slane %v14_v41, %v220_v45 }
   0x9   :  { %v307_v52 = vrot.slane %v14_v41, %v306_v46  ;;  %v311_v53 = vrot.slane %v14_v41, %v310_v47 }
   0xa   :  { %60 = vperm.xlu1 %438, %v20_v5   ;;  %55 = vperm.xlu0 %437, %v19_v6   ;;  %v92_v54 = vrot.slane %v82_v48, %v81_v39  ;;  %v96_v55 = vrot.slane %v86_v49, %v81_v39  ;;  %v527_v58 = vrot.slane %v217_v50, %v216_v44 }
   0xb   :  { %v529_v59 = vrot.slane %v221_v51, %v216_v44  ;;  %v531_v60 = vrot.slane %v307_v52, %v306_v46  ;;  %v533_v61 = vrot.slane %v311_v53, %v306_v46 }
   0xe   :  { %70 = vperm.xlu1 %438, %v22_v7   ;;  %65 = vperm.xlu0 %437, %v21_v8  }
  0x12   :  { %117 = vperm.xlu1 %438, %v24_v9   ;;  %75 = vperm.xlu0 %437, %v23_v10  }
  0x16   :  { %127 = vperm.xlu1 %438, %v26_v11   ;;  %122 = vperm.xlu0 %437, %v25_v12  }
  0x1a   :  { %137 = vperm.xlu1 %438, %v28_v13   ;;  %132 = vperm.xlu0 %437, %v27_v14  }
  0x1e   :  { %147 = vperm.xlu1 %438, %v30_v15   ;;  %142 = vperm.xlu0 %437, %v29_v16  }
  0x22   :  { %157 = vperm.xlu1 %438, %v32_v17   ;;  %152 = vperm.xlu0 %437, %v31_v18  }
  0x26   :  { %440 = vset.pattern.permute.xlu1 %v444_v19  ;;  %439 = vset.pattern.permute.xlu0 %v444_v19 }
  0x27   :  { %183 = vperm.xlu1 %440, %v16_v4   ;;  %179 = vperm.xlu0 %439, %v15_v2  }
  0x2b   :  { %187 = vperm.xlu1 %440, %v17_v1   ;;  %191 = vperm.xlu0 %439, %v18_v3  }
  0x2f   :  { %195 = vperm.xlu1 %440, %v19_v6   ;;  %199 = vperm.xlu0 %439, %v20_v5  }
  0x33   :  { %203 = vperm.xlu1 %440, %v21_v8   ;;  %207 = vperm.xlu0 %439, %v22_v7  }
  0x37   :  { %211 = vperm.xlu1 %440, %v23_v10   ;;  %441 = vset.pattern.permute.xlu0 %v445_v20 }
  0x38   :  { %269 = vperm.xlu0 %441, %v15_v2  }
  0x3b   :  { %442 = vset.pattern.permute.xlu1 %v445_v20 }
  0x3c   :  { %273 = vperm.xlu1 %442, %v16_v4   ;;  %281 = vperm.xlu0 %441, %v18_v3  }
  0x40   :  { %277 = vperm.xlu1 %442, %v17_v1   ;;  %289 = vperm.xlu0 %441, %v20_v5  }
  0x44   :  { %285 = vperm.xlu1 %442, %v19_v6   ;;  %297 = vperm.xlu0 %441, %v22_v7  }
  0x48   :  { %293 = vperm.xlu1 %442, %v21_v8  }
  0x4c   :  { %301 = vperm.xlu1 %442, %v23_v10  }
  0x81   :  { %v46_v21 = vpop.permute.xlu1 %45  ;;  %v36_v22 = vpop.permute.xlu0 %35 }
  0x82   :  { %v101_v62 = vmul.f32 %v92_v54, %v46_v21  ;;  %v102_v63 = vmul.f32 %v96_v55, %v46_v21  ;;  %v97_v0 = vmul.f32 %v92_v54, %v36_v22  ;;  %v98_v1 = vmul.f32 %v96_v55, %v36_v22 }
  0x85   :  { %v51_v23 = vpop.permute.xlu1 %50  ;;  %v41_v24 = vpop.permute.xlu0 %40 }
  0x86   :  { %v103_v4 = vmul.f32 %v92_v54, %v51_v23  ;;  %v104_v5 = vmul.f32 %v96_v55, %v51_v23  ;;  %v99_v6 = vmul.f32 %v92_v54, %v41_v24  ;;  %v100_v7 = vmul.f32 %v96_v55, %v41_v24 }
  0x89   :  { %v61_v25 = vpop.permute.xlu1 %60  ;;  %v56_v26 = vpop.permute.xlu0 %55 }
  0x8a   :  { %v107_v8 = vmul.f32 %v92_v54, %v61_v25  ;;  %v108_v9 = vmul.f32 %v96_v55, %v61_v25  ;;  %v105_v10 = vmul.f32 %v92_v54, %v56_v26  ;;  %v106_v11 = vmul.f32 %v96_v55, %v56_v26 }
  0x8d   :  { %v71_v27 = vpop.permute.xlu1 %70  ;;  %v66_v28 = vpop.permute.xlu0 %65 }
  0x8e   :  { %v111_v12 = vmul.f32 %v92_v54, %v71_v27  ;;  %v112_v13 = vmul.f32 %v96_v55, %v71_v27  ;;  %v109_v14 = vmul.f32 %v92_v54, %v66_v28  ;;  %v110_v15 = vmul.f32 %v96_v55, %v66_v28 }
  0x91   :  { %v118_v29 = vpop.permute.xlu1 %117  ;;  %v76_v30 = vpop.permute.xlu0 %75 }
  0x92   :  { %v160_v16 = vadd.f32 %v118_v29, %v97_v0  ;;  %v161_v17 = vadd.f32 %v118_v29, %v98_v1  ;;  %v113_v18 = vmul.f32 %v92_v54, %v76_v30  ;;  %v114_v19 = vmul.f32 %v96_v55, %v76_v30 }
  0x95   :  { %v128_v31 = vpop.permute.xlu1 %127  ;;  %v123_v32 = vpop.permute.xlu0 %122 }
  0x96   :  { %v164_v22 = vadd.f32 %v128_v31, %v101_v62  ;;  %v165_v33 = vadd.f32 %v128_v31, %v102_v63  ;;  %v162_v36 = vadd.f32 %v123_v32, %v99_v6  ;;  %v163_v23 = vadd.f32 %v123_v32, %v100_v7 }
  0x99   :  { %v138_v34 = vpop.permute.xlu1 %137  ;;  %v133_v35 = vpop.permute.xlu0 %132 }
  0x9a   :  { %v168_v39 = vadd.f32 %v138_v34, %v105_v10  ;;  %v169_v24 = vadd.f32 %v138_v34, %v106_v11  ;;  %v166_v40 = vadd.f32 %v133_v35, %v103_v4  ;;  %v167_v25 = vadd.f32 %v133_v35, %v104_v5 }
  0x9d   :  { %v148_v37 = vpop.permute.xlu1 %147  ;;  %v143_v38 = vpop.permute.xlu0 %142 }
  0x9e   :  { %v172_v41 = vadd.f32 %v148_v37, %v109_v14  ;;  %v173_v26 = vadd.f32 %v148_v37, %v110_v15  ;;  %v170_v44 = vadd.f32 %v143_v38, %v107_v8  ;;  %v171_v29 = vadd.f32 %v143_v38, %v108_v9 }
  0xa1   :  { %v523_v42 = vpop.permute.xlu1 %157  ;;  %v525_v43 = vpop.permute.xlu0 %152 }
  0xa2   :  { %v176_v32 = vadd.f32 %v523_v42, %v113_v18  ;;  %v177_v34 = vadd.f32 %v523_v42, %v114_v19  ;;  %v174_v47 = vadd.f32 %v525_v43, %v111_v12  ;;  %v175_v48 = vadd.f32 %v525_v43, %v112_v13 }
  0xa6   :  { %v184_v56 = vpop.permute.xlu1 %183  ;;  %v180_v57 = vpop.permute.xlu0 %179 }
  0xa7   :  { %v234_v27 = vmul.f32 %v527_v58, %v184_v56  ;;  %v235_v28 = vmul.f32 %v529_v59, %v184_v56  ;;  %v232_v30 = vmul.f32 %v527_v58, %v180_v57  ;;  %v233_v45 = vmul.f32 %v529_v59, %v180_v57 }
  0xa9   :  { %v252_v50 = vadd.f32 %v234_v27, %v162_v36  ;;  %v253_v51 = vadd.f32 %v235_v28, %v163_v23  ;;  %v250_v54 = vadd.f32 %v232_v30, %v160_v16  ;;  %v251_v42 = vadd.f32 %v233_v45, %v161_v17 }
  0xaa   :  { %v188_v2 = vpop.permute.xlu1 %187  ;;  %v192_v3 = vpop.permute.xlu0 %191 }
  0xab   :  { %v236_v35 = vmul.f32 %v527_v58, %v188_v2  ;;  %v237_v37 = vmul.f32 %v529_v59, %v188_v2  ;;  %v238_v38 = vmul.f32 %v527_v58, %v192_v3  ;;  %v239_v49 = vmul.f32 %v529_v59, %v192_v3 }
  0xad   :  { %v254_v62 = vadd.f32 %v236_v35, %v164_v22  ;;  %v255_v63 = vadd.f32 %v237_v37, %v165_v33  ;;  %v256_v2 = vadd.f32 %v238_v38, %v166_v40  ;;  %v257_v3 = vadd.f32 %v239_v49, %v167_v25 }
  0xae   :  { %v196_v20 = vpop.permute.xlu1 %195  ;;  %v200_v21 = vpop.permute.xlu0 %199 }
  0xaf   :  { %v240_v52 = vmul.f32 %v527_v58, %v196_v20  ;;  %v241_v53 = vmul.f32 %v529_v59, %v196_v20  ;;  %v242_v55 = vmul.f32 %v527_v58, %v200_v21  ;;  %v243_v56 = vmul.f32 %v529_v59, %v200_v21 }
  0xb1   :  { %v555_v6 = vadd.f32 %v240_v52, %v168_v39  ;;  %v557_v7 = vadd.f32 %v241_v53, %v169_v24  ;;  %v260_v10 = vadd.f32 %v242_v55, %v170_v44  ;;  %v261_v11 = vadd.f32 %v243_v56, %v171_v29 }
  0xb2   :  { %v204_v46 = vpop.permute.xlu1 %203  ;;  %v208_v31 = vpop.permute.xlu0 %207 }
  0xb3   :  { %v244_v43 = vmul.f32 %v527_v58, %v204_v46  ;;  %v245_v0 = vmul.f32 %v529_v59, %v204_v46  ;;  %v246_v8 = vmul.f32 %v527_v58, %v208_v31  ;;  %v247_v9 = vmul.f32 %v529_v59, %v208_v31 }
  0xb5   :  { %v561_v14 = vadd.f32 %v244_v43, %v172_v41  ;;  %v563_v15 = vadd.f32 %v245_v0, %v173_v26  ;;  %v264_v36 = vadd.f32 %v246_v8, %v174_v47  ;;  %v265_v23 = vadd.f32 %v247_v9, %v175_v48 }
  0xb6   :  { %v212_v57 = vpop.permute.xlu1 %211 }
  0xb7   :  { %v270_v1 = vpop.permute.xlu0 %269  ;;  %v248_v16 = vmul.f32 %v527_v58, %v212_v57  ;;  %v249_v17 = vmul.f32 %v529_v59, %v212_v57 }
  0xb8   :  { %v322_v4 = vmul.f32 %v531_v60, %v270_v1  ;;  %v323_v5 = vmul.f32 %v533_v61, %v270_v1 }
  0xb9   :  { %v571_v26 = vadd.f32 %v248_v16, %v176_v32  ;;  %v573_v59 = vadd.f32 %v249_v17, %v177_v34 }
  0xba   :  { %v340_v12 = vadd.f32 %v322_v4, %v250_v54  ;;  %v341_v13 = vadd.f32 %v323_v5, %v251_v42 }
  0xbb   :  { %v274_v18 = vpop.permute.xlu1 %273  ;;  %v282_v19 = vpop.permute.xlu0 %281 }
  0xbc   :  { %v358_v20 = vmax.f32 %v340_v12, 0.0  ;;  %v359_v21 = vmax.f32 %v341_v13, 0.0  ;;  %v324_v22 = vmul.f32 %v531_v60, %v274_v18  ;;  %v325_v33 = vmul.f32 %v533_v61, %v274_v18 }
  0xbd   :  { %v328_v39 = vmul.f32 %v531_v60, %v282_v19  ;;  %v329_v24 = vmul.f32 %v533_v61, %v282_v19 }
  0xbe   :  { %v376_v40 = vmin.f32 %v358_v20, 6.0  ;;  %v377_v25 = vmin.f32 %v359_v21, 6.0  ;;  %v342_v41 = vadd.f32 %v324_v22, %v252_v50  ;;  %v343_v58 = vadd.f32 %v325_v33, %v253_v51 }
  0xbf   :  { %v346_v27 = vadd.f32 %v328_v39, %v256_v2  ;;  %v347_v28 = vadd.f32 %v329_v24, %v257_v3  ;;  %v278_v44 = vpop.permute.xlu1 %277  ;;  %v290_v29 = vpop.permute.xlu0 %289 }
  0xc0   :  { %v394_v30 = vmul.f32 0.16666667, %v376_v40  ;;  %v395_v45 = vmul.f32 0.16666667, %v377_v25  ;;  %v360_v46 = vmax.f32 %v342_v41, 0.0  ;;  %v361_v31 = vmax.f32 %v343_v58, 0.0 }
  0xc1   :  { %v364_v35 = vmax.f32 %v346_v27, 0.0  ;;  %v365_v37 = vmax.f32 %v347_v28, 0.0  ;;  %v326_v47 = vmul.f32 %v531_v60, %v278_v44  ;;  %v327_v48 = vmul.f32 %v533_v61, %v278_v44 }
  0xc2   :  { %412 = vst [vmem:[%s650_s3] sm:$0xff] %v394_v30  ;;  %413 = vst [vmem:[%s650_s3 + $0x8] sm:$0xff] %v395_v45  ;;  %v378_v32 = vmin.f32 %v360_v46, 6.0  ;;  %v379_v34 = vmin.f32 %v361_v31, 6.0  ;;  %v332_v38 = vmul.f32 %v531_v60, %v290_v29  ;;  %v333_v49 = vmul.f32 %v533_v61, %v290_v29 }
  0xc3   :  { %v382_v50 = vmin.f32 %v364_v35, 6.0  ;;  %v383_v51 = vmin.f32 %v365_v37, 6.0  ;;  %v344_v52 = vadd.f32 %v326_v47, %v254_v62  ;;  %v345_v53 = vadd.f32 %v327_v48, %v255_v63  ;;  %v286_v54 = vpop.permute.xlu1 %285  ;;  %v298_v43 = vpop.permute.xlu0 %297 }
  0xc4   :  { %v396_v42 = vmul.f32 0.16666667, %v378_v32  ;;  %v397_v55 = vmul.f32 0.16666667, %v379_v34  ;;  %v350_v56 = vadd.f32 %v332_v38, %v260_v10  ;;  %v351_v57 = vadd.f32 %v333_v49, %v261_v11 }
  0xc5   :  { %v400_v0 = vmul.f32 0.16666667, %v382_v50  ;;  %v401_v1 = vmul.f32 0.16666667, %v383_v51  ;;  %v362_v2 = vmax.f32 %v344_v52, 0.0  ;;  %v363_v3 = vmax.f32 %v345_v53, 0.0 }
  0xc6   :  { %414 = vst [vmem:[%s650_s3 + $0x10] sm:$0xff] %v396_v42  ;;  %415 = vst [vmem:[%s650_s3 + $0x18] sm:$0xff] %v397_v55  ;;  %v368_v62 = vmax.f32 %v350_v56, 0.0  ;;  %v369_v63 = vmax.f32 %v351_v57, 0.0  ;;  %v330_v4 = vmul.f32 %v531_v60, %v286_v54  ;;  %v331_v5 = vmul.f32 %v533_v61, %v286_v54 }
  0xc7   :  { %418 = vst [vmem:[%s650_s3 + $0x30] sm:$0xff] %v400_v0  ;;  %419 = vst [vmem:[%s650_s3 + $0x38] sm:$0xff] %v401_v1  ;;  %v380_v8 = vmin.f32 %v362_v2, 6.0  ;;  %v381_v9 = vmin.f32 %v363_v3, 6.0  ;;  %v336_v10 = vmul.f32 %v531_v60, %v298_v43  ;;  %v337_v11 = vmul.f32 %v533_v61, %v298_v43  ;;  %v294_v12 = vpop.permute.xlu1 %293 }
  0xc8   :  { %v386_v13 = vmin.f32 %v368_v62, 6.0  ;;  %v387_v16 = vmin.f32 %v369_v63, 6.0  ;;  %v348_v17 = vadd.f32 %v330_v4, %v555_v6  ;;  %v349_v18 = vadd.f32 %v331_v5, %v557_v7 }
  0xc9   :  { %v398_v19 = vmul.f32 0.16666667, %v380_v8  ;;  %v399_v20 = vmul.f32 0.16666667, %v381_v9  ;;  %v354_v21 = vadd.f32 %v336_v10, %v264_v36  ;;  %v355_v22 = vadd.f32 %v337_v11, %v265_v23 }
  0xca   :  { %v404_v33 = vmul.f32 0.16666667, %v386_v13  ;;  %v405_v39 = vmul.f32 0.16666667, %v387_v16  ;;  %v366_v24 = vmax.f32 %v348_v17, 0.0  ;;  %v367_v40 = vmax.f32 %v349_v18, 0.0 }
  0xcb   :  { %416 = vst [vmem:[%s650_s3 + $0x20] sm:$0xff] %v398_v19  ;;  %417 = vst [vmem:[%s650_s3 + $0x28] sm:$0xff] %v399_v20  ;;  %v372_v25 = vmax.f32 %v354_v21, 0.0  ;;  %v373_v6 = vmax.f32 %v355_v22, 0.0  ;;  %v334_v7 = vmul.f32 %v531_v60, %v294_v12  ;;  %v335_v41 = vmul.f32 %v533_v61, %v294_v12  ;;  %v302_v36 = vpop.permute.xlu1 %301 }
  0xcc   :  { %422 = vst [vmem:[%s650_s3 + $0x50] sm:$0xff] %v404_v33  ;;  %423 = vst [vmem:[%s650_s3 + $0x58] sm:$0xff] %v405_v39  ;;  %v384_v23 = vmin.f32 %v366_v24, 6.0  ;;  %v385_v58 = vmin.f32 %v367_v40, 6.0  ;;  %v338_v27 = vmul.f32 %v531_v60, %v302_v36  ;;  %v339_v28 = vmul.f32 %v533_v61, %v302_v36 }
  0xcd   :  { %v390_v44 = vmin.f32 %v372_v25, 6.0  ;;  %v391_v29 = vmin.f32 %v373_v6, 6.0  ;;  %v352_v30 = vadd.f32 %v334_v7, %v561_v14  ;;  %v353_v45 = vadd.f32 %v335_v41, %v563_v15 }
  0xce   :  { %v402_v46 = vmul.f32 0.16666667, %v384_v23  ;;  %v403_v31 = vmul.f32 0.16666667, %v385_v58  ;;  %v356_v35 = vadd.f32 %v338_v27, %v571_v26  ;;  %v357_v37 = vadd.f32 %v339_v28, %v573_v59 }
  0xcf   :  { %v408_v47 = vmul.f32 0.16666667, %v390_v44  ;;  %v409_v48 = vmul.f32 0.16666667, %v391_v29  ;;  %v370_v32 = vmax.f32 %v352_v30, 0.0  ;;  %v371_v34 = vmax.f32 %v353_v45, 0.0 }
  0xd0   :  { %420 = vst [vmem:[%s650_s3 + $0x40] sm:$0xff] %v402_v46  ;;  %421 = vst [vmem:[%s650_s3 + $0x48] sm:$0xff] %v403_v31  ;;  %v374_v60 = vmax.f32 %v356_v35, 0.0  ;;  %v375_v61 = vmax.f32 %v357_v37, 0.0 }
  0xd1   :  { %426 = vst [vmem:[%s650_s3 + $0x70] sm:$0xff] %v408_v47  ;;  %427 = vst [vmem:[%s650_s3 + $0x78] sm:$0xff] %v409_v48  ;;  %v388_v14 = vmin.f32 %v370_v32, 6.0  ;;  %v389_v15 = vmin.f32 %v371_v34, 6.0 }
  0xd2   :  { %v392_v26 = vmin.f32 %v374_v60, 6.0  ;;  %v393_v59 = vmin.f32 %v375_v61, 6.0 }
  0xd3   :  { %v406_v38 = vmul.f32 0.16666667, %v388_v14  ;;  %v407_v49 = vmul.f32 0.16666667, %v389_v15 }
  0xd4   :  { %v410_v50 = vmul.f32 0.16666667, %v392_v26  ;;  %v411_v51 = vmul.f32 0.16666667, %v393_v59 }
  0xd5   :  { %424 = vst [vmem:[%s650_s3 + $0x60] sm:$0xff] %v406_v38  ;;  %425 = vst [vmem:[%s650_s3 + $0x68] sm:$0xff] %v407_v49 }
  0xd6   :  { %428 = vst [vmem:[%s650_s3 + $0x80] sm:$0xff] %v410_v50  ;;  %429 = vst [vmem:[%s650_s3 + $0x88] sm:$0xff] %v411_v51 }

</bundles_post_ra>
